<compile_context>
chip_gen: v6e
topology: v6e:2x2x1
jax: 0.10.0
libtpu: 0.0.40
codegen_flags: <defaults>
</compile_context>

<pallas_src>
import jax
import jax.numpy as jnp
from jax.experimental import pallas as pl
from jax.experimental.pallas import tpu as pltpu


def policy_net_kernel(x_ref, w1_ref, b1_ref, w2_ref, b2_ref, wd_ref, bd_ref,
                      out_ref):
    # x_ref is the transposed batch tile: (4, TB); batch lives on the lane axis.
    x = x_ref[...]                                        # (4, TB) f32 or bf16

    # ---- fc1 + ReLU (MXU, f32 accumulation; bias/ReLU on the VPU in f32) ----
    h1 = jnp.dot(w1_ref[...], x, preferred_element_type=jnp.float32)  # (64, TB)
    h1 = jnp.maximum(h1 + b1_ref[...], 0.0)

    # ---- fc2 + ReLU (MXU, f32 accumulation) ----
    h2 = jnp.dot(w2_ref[...], h1.astype(w2_ref.dtype),
                 preferred_element_type=jnp.float32)      # (64, TB)
    h2 = jnp.maximum(h2 + b2_ref[...], 0.0)

    # ---- fc3 + 2-class softmax folded into one difference row ----
    # d = l1 - l0 = (w3[1]-w3[0]) @ h2 + (b3[1]-b3[0])
    d = jnp.dot(wd_ref[...], h2.astype(wd_ref.dtype),
                preferred_element_type=jnp.float32)       # (1, TB)
    d = d + bd_ref[...]

    # softmax([l0, l1]) == [1/(1+e^d), e^d/(1+e^d)].
    # exp + approx reciprocal ride the otherwise-idle EUP; one Newton step
    # restores ~f32 accuracy so p0+p1 == 1 to ~1e-7.
    # NOTE: when B % TB != 0 the padded tail lanes may see garbage -> inf/NaN
    # here; those output columns are discarded, so no whole-tile reductions
    # may ever be added over this row.
    e = jnp.exp(d)
    denom = 1.0 + e
    inv = pl.reciprocal(denom, approx=True)
    inv = inv * (2.0 - denom * inv)                       # Newton refinement
    p0 = inv
    p1 = e * inv                                          # keeps minority-class precision

    # Single unmasked full-block store (matters most on v5e's single vst slot).
    out_ref[...] = jnp.concatenate([p0, p1], axis=0).astype(out_ref.dtype)


def _pick_tile(batch, block_b):
    """Batch-tile size: full block for small B; otherwise a multiple of 128,
    aimed at >=2 grid steps so the 'parallel' axis can shard across v7x's two
    TensorCores, capped at block_b."""
    if batch <= 256:
        return batch                       # block == full array dims
    half = (pl.cdiv(batch, 2) + 127) // 128 * 128
    return min(half, block_b)


def policy_net_forward_t(xT, params, *, block_b=16384, use_bf16=True):
    """Feature-major forward: xT (4, B) float -> (2, B) float32 probabilities.

    Preferred production entry point: keeps the rollout buffer feature-major
    end-to-end and avoids the wrapper-side relayout kernels.
    """
    w1, b1, w2, b2, w3, b3 = params
    B = xT.shape[1]
    TB = _pick_tile(B, block_b)
    grid = (pl.cdiv(B, TB),)

    # Fold fc3 + softmax into a single difference row (host-side, once).
    wd = w3[1:2, :] - w3[0:1, :]                          # (1, 64)
    bd = b3[1:2, :] - b3[0:1, :]                          # (1, 1)

    if use_bf16:
        # bf16 MXU inputs (v5e/v6e/v7x MXUs are bf16-native); biases and all
        # accumulation / element-wise math stay f32.
        xT = xT.astype(jnp.bfloat16)
        w1 = w1.astype(jnp.bfloat16)
        w2 = w2.astype(jnp.bfloat16)
        wd = wd.astype(jnp.bfloat16)

    def weight_spec(shape):
        # Constant index_map -> weights stay VMEM-resident across grid steps.
        return pl.BlockSpec(shape, lambda i: (0, 0))

    x_bytes = 2 if use_bf16 else 4
    flops = 2 * B * (4 * 64 + 64 * 64 + 64)
    param_bytes = (64 * 4 + 64 + 64 * 64 + 64 + 64 + 1) * 4
    bytes_accessed = B * 4 * x_bytes + B * 2 * 4 + param_bytes

    # TODO(synk): if profiling shows the x DMA exposed at large TB, add
    # pipeline_mode=pl.Buffered(3) to the x BlockSpec only (weights never
    # re-DMA, so deeper buffering there would just waste VMEM).
    out_T = pl.pallas_call(
        policy_net_kernel,
        out_shape=jax.ShapeDtypeStruct((2, B), jnp.float32),
        grid=grid,
        in_specs=[
            pl.BlockSpec((4, TB), lambda i: (0, i)),      # x^T batch tile
            weight_spec((64, 4)),                         # w1 (out, in)
            weight_spec((64, 1)),                         # b1
            weight_spec((64, 64)),                        # w2
            weight_spec((64, 1)),                         # b2
            weight_spec((1, 64)),                         # wd = w3[1]-w3[0]
            weight_spec((1, 1)),                          # bd = b3[1]-b3[0]
        ],
        out_specs=pl.BlockSpec((2, TB), lambda i: (0, i)),
        compiler_params=pltpu.CompilerParams(
            dimension_semantics=("parallel",)),
        cost_estimate=pl.CostEstimate(
            flops=flops, transcendentals=2 * B, bytes_accessed=bytes_accessed),
    )(xT, w1, b1, w2, b2, wd, bd)

    return out_T                                          # (2, B)


def policy_net_forward(x, params, **kwargs):
    """(B, 4) -> (B, 2), matching the PyTorch module's interface.

    NOTE: the two transposes here are separate XLA relayout kernels whose HBM
    traffic rivals the kernel's own; production code should keep the rollout
    buffer feature-major and call policy_net_forward_t directly.
    """
    return policy_net_forward_t(x.T, params, **kwargs).T


def init_params(key):
    """torch.nn.Linear-style init; weights stored (out, in), biases (out, 1)."""
    def linear(k, fan_in, fan_out):
        kw, kb = jax.random.split(k)
        bound = 1.0 / jnp.sqrt(jnp.float32(fan_in))
        w = jax.random.uniform(kw, (fan_out, fan_in), jnp.float32, -bound, bound)
        b = jax.random.uniform(kb, (fan_out, 1), jnp.float32, -bound, bound)
        return w, b

    k1, k2, k3 = jax.random.split(key, 3)
    w1, b1 = linear(k1, 4, 64)
    w2, b2 = linear(k2, 64, 64)
    w3, b3 = linear(k3, 64, 2)
    return (w1, b1, w2, b2, w3, b3)


def reference_forward(x, params):
    """Pure-JAX reference matching the PyTorch module."""
    w1, b1, w2, b2, w3, b3 = params
    h1 = jnp.maximum(x @ w1.T + b1[:, 0], 0.0)
    h2 = jnp.maximum(h1 @ w2.T + b2[:, 0], 0.0)
    logits = h2 @ w3.T + b3[:, 0]
    return jax.nn.softmax(logits, axis=-1)


if __name__ == "__main__":
    key = jax.random.PRNGKey(0)
    k_params, k_x = jax.random.split(key)

    params = init_params(k_params)
    # CartPole observation: 4 features per example; small batch of 8.
    B = 8
    x = jax.random.normal(k_x, (B, 4), dtype=jnp.float32)
    ref = reference_forward(x, params)

    # f32 path: tight check against the dense-JAX reference.
    probs = jax.block_until_ready(policy_net_forward(x, params, use_bf16=False))
    assert probs.shape == (B, 2)
    assert bool(jnp.all(jnp.isfinite(probs)))
    assert bool(jnp.allclose(jnp.sum(probs, axis=-1), 1.0, atol=1e-5))
    assert bool(jnp.allclose(probs, ref, atol=2e-3, rtol=2e-3))

    # bf16 MXU-input path (default): looser tolerance for bf16 rounding.
    probs_bf16 = jax.block_until_ready(policy_net_forward(x, params, use_bf16=True))
    assert bool(jnp.all(jnp.isfinite(probs_bf16)))
    assert bool(jnp.allclose(jnp.sum(probs_bf16, axis=-1), 1.0, atol=1e-5))
    assert bool(jnp.allclose(probs_bf16, ref, atol=2e-2, rtol=2e-2))

    # Feature-major API (no wrapper transposes) on a batch large enough to get
    # a 2-step "parallel" grid (TB=256, grid=(2,)).
    B2 = 512
    xT2 = jax.random.normal(jax.random.PRNGKey(1), (4, B2), dtype=jnp.float32)
    probs_t = jax.block_until_ready(
        policy_net_forward_t(xT2, params, use_bf16=False))
    ref2 = reference_forward(xT2.T, params)
    assert probs_t.shape == (2, B2)
    assert bool(jnp.allclose(jnp.sum(probs_t, axis=0), 1.0, atol=1e-5))
    assert bool(jnp.allclose(probs_t.T, ref2, atol=2e-3, rtol=2e-3))

    print("KERNEL_OK")
</pallas_src>

<mosaic_0001>
module attributes {stable_mosaic.version = 11 : i64} {
  func.func @policy_net_kernel(%arg0: i32, %arg1: memref<4x8xf32, #tpu.memory_space<vmem>>, %arg2: memref<64x4xf32, #tpu.memory_space<vmem>>, %arg3: memref<64x1xf32, #tpu.memory_space<vmem>>, %arg4: memref<64x64xf32, #tpu.memory_space<vmem>>, %arg5: memref<64x1xf32, #tpu.memory_space<vmem>>, %arg6: memref<1x64xf32, #tpu.memory_space<vmem>>, %arg7: memref<1x1xf32, #tpu.memory_space<vmem>>, %arg8: memref<2x8xf32, #tpu.memory_space<vmem>>) attributes {dimension_semantics = [#tpu.dimension_semantics<parallel>], iteration_bounds = array<i64: 1>, scalar_prefetch = 0 : i64, scratch_operands = 0 : i64, tpu.core_type = #tpu.core_type<tc>, window_params = [{transform_indices = @transform_0, window_bounds = array<i64: 4, 8>}, {pipeline_mode = #tpu.pipeline_mode<synchronous>, transform_indices = @transform_1, window_bounds = array<i64: 64, 4>}, {pipeline_mode = #tpu.pipeline_mode<synchronous>, transform_indices = @transform_2, window_bounds = array<i64: 64, 1>}, {pipeline_mode = #tpu.pipeline_mode<synchronous>, transform_indices = @transform_3, window_bounds = array<i64: 64, 64>}, {pipeline_mode = #tpu.pipeline_mode<synchronous>, transform_indices = @transform_4, window_bounds = array<i64: 64, 1>}, {pipeline_mode = #tpu.pipeline_mode<synchronous>, transform_indices = @transform_5, window_bounds = array<i64: 1, 64>}, {pipeline_mode = #tpu.pipeline_mode<synchronous>, transform_indices = @transform_6, window_bounds = array<i64: 1, 1>}, {transform_indices = @transform_7, window_bounds = array<i64: 2, 8>}]} {
    %c0 = arith.constant 0 : index
    %c0_0 = arith.constant 0 : index
    %0 = vector.load %arg1[%c0, %c0_0] : memref<4x8xf32, #tpu.memory_space<vmem>>, vector<4x8xf32>
    %c0_1 = arith.constant 0 : index
    %c0_2 = arith.constant 0 : index
    %1 = vector.load %arg2[%c0_1, %c0_2] : memref<64x4xf32, #tpu.memory_space<vmem>>, vector<64x4xf32>
    %cst = arith.constant dense<0.000000e+00> : vector<64x8xf32>
    %2 = tpu.matmul %1, %0, %cst {dimension_numbers = #tpu.dot_dimension_numbers<[1], [0], [0], [1], [0, 0, 1, 1], [], []>} : vector<64x4xf32>, vector<4x8xf32>, vector<64x8xf32> -> vector<64x8xf32>
    %c0_3 = arith.constant 0 : index
    %c0_4 = arith.constant 0 : index
    %3 = vector.load %arg3[%c0_3, %c0_4] : memref<64x1xf32, #tpu.memory_space<vmem>>, vector<64x1xf32>
    %4 = vector.broadcast %3 : vector<64x1xf32> to vector<64x8xf32>
    %5 = arith.addf %2, %4 : vector<64x8xf32>
    %cst_5 = arith.constant 0.000000e+00 : f32
    %6 = vector.broadcast %cst_5 : f32 to vector<64x8xf32>
    %7 = arith.maximumf %5, %6 : vector<64x8xf32>
    %c0_6 = arith.constant 0 : index
    %c0_7 = arith.constant 0 : index
    %8 = vector.load %arg4[%c0_6, %c0_7] : memref<64x64xf32, #tpu.memory_space<vmem>>, vector<64x64xf32>
    %cst_8 = arith.constant dense<0.000000e+00> : vector<64x8xf32>
    %9 = tpu.matmul %8, %7, %cst_8 {dimension_numbers = #tpu.dot_dimension_numbers<[1], [0], [0], [1], [0, 0, 1, 1], [], []>} : vector<64x64xf32>, vector<64x8xf32>, vector<64x8xf32> -> vector<64x8xf32>
    %c0_9 = arith.constant 0 : index
    %c0_10 = arith.constant 0 : index
    %10 = vector.load %arg5[%c0_9, %c0_10] : memref<64x1xf32, #tpu.memory_space<vmem>>, vector<64x1xf32>
    %11 = vector.broadcast %10 : vector<64x1xf32> to vector<64x8xf32>
    %12 = arith.addf %9, %11 : vector<64x8xf32>
    %cst_11 = arith.constant 0.000000e+00 : f32
    %13 = vector.broadcast %cst_11 : f32 to vector<64x8xf32>
    %14 = arith.maximumf %12, %13 : vector<64x8xf32>
    %c0_12 = arith.constant 0 : index
    %c0_13 = arith.constant 0 : index
    %15 = vector.load %arg6[%c0_12, %c0_13] : memref<1x64xf32, #tpu.memory_space<vmem>>, vector<1x64xf32>
    %cst_14 = arith.constant dense<0.000000e+00> : vector<1x8xf32>
    %16 = tpu.matmul %15, %14, %cst_14 {dimension_numbers = #tpu.dot_dimension_numbers<[1], [0], [0], [1], [0, 0, 1, 1], [], []>} : vector<1x64xf32>, vector<64x8xf32>, vector<1x8xf32> -> vector<1x8xf32>
    %c0_15 = arith.constant 0 : index
    %c0_16 = arith.constant 0 : index
    %17 = vector.load %arg7[%c0_15, %c0_16] : memref<1x1xf32, #tpu.memory_space<vmem>>, vector<1x1xf32>
    %18 = vector.broadcast %17 : vector<1x1xf32> to vector<1x8xf32>
    %19 = arith.addf %16, %18 : vector<1x8xf32>
    %20 = math.exp %19 : vector<1x8xf32>
    %cst_17 = arith.constant 1.000000e+00 : f32
    %21 = vector.broadcast %cst_17 : f32 to vector<1x8xf32>
    %22 = arith.addf %21, %20 : vector<1x8xf32>
    %23 = tpu.reciprocal %22 {approx = true} : vector<1x8xf32> -> vector<1x8xf32>
    %24 = arith.mulf %22, %23 : vector<1x8xf32>
    %cst_18 = arith.constant 2.000000e+00 : f32
    %25 = vector.broadcast %cst_18 : f32 to vector<1x8xf32>
    %26 = arith.subf %25, %24 : vector<1x8xf32>
    %27 = arith.mulf %23, %26 : vector<1x8xf32>
    %28 = arith.mulf %20, %27 : vector<1x8xf32>
    %29 = tpu.concatenate %27, %28 in 0 : vector<1x8xf32>, vector<1x8xf32> -> vector<2x8xf32>
    %c0_19 = arith.constant 0 : index
    %c0_20 = arith.constant 0 : index
    %30 = vector.load %arg8[%c0_19, %c0_20] : memref<2x8xf32, #tpu.memory_space<vmem>>, vector<2x8xf32>
    tpu.vector_store %arg8[%c0_19, %c0_20], %29 {strides = array<i32>} : memref<2x8xf32, #tpu.memory_space<vmem>>, vector<2x8xf32>,
    return
  }
  func.func @transform_0(%arg0: i32) -> (i32, i32) {
    %c0_i32 = arith.constant 0 : i32
    %c0_i32_0 = arith.constant 0 : i32
    return %c0_i32, %arg0 : i32, i32
  }
  func.func @transform_1(%arg0: i32) -> (i32, i32) {
    %c0_i32 = arith.constant 0 : i32
    %c0_i32_0 = arith.constant 0 : i32
    %c0_i32_1 = arith.constant 0 : i32
    return %c0_i32, %c0_i32_0 : i32, i32
  }
  func.func @transform_2(%arg0: i32) -> (i32, i32) {
    %c0_i32 = arith.constant 0 : i32
    %c0_i32_0 = arith.constant 0 : i32
    %c0_i32_1 = arith.constant 0 : i32
    return %c0_i32, %c0_i32_0 : i32, i32
  }
  func.func @transform_3(%arg0: i32) -> (i32, i32) {
    %c0_i32 = arith.constant 0 : i32
    %c0_i32_0 = arith.constant 0 : i32
    %c0_i32_1 = arith.constant 0 : i32
    return %c0_i32, %c0_i32_0 : i32, i32
  }
  func.func @transform_4(%arg0: i32) -> (i32, i32) {
    %c0_i32 = arith.constant 0 : i32
    %c0_i32_0 = arith.constant 0 : i32
    %c0_i32_1 = arith.constant 0 : i32
    return %c0_i32, %c0_i32_0 : i32, i32
  }
  func.func @transform_5(%arg0: i32) -> (i32, i32) {
    %c0_i32 = arith.constant 0 : i32
    %c0_i32_0 = arith.constant 0 : i32
    %c0_i32_1 = arith.constant 0 : i32
    return %c0_i32, %c0_i32_0 : i32, i32
  }
  func.func @transform_6(%arg0: i32) -> (i32, i32) {
    %c0_i32 = arith.constant 0 : i32
    %c0_i32_0 = arith.constant 0 : i32
    %c0_i32_1 = arith.constant 0 : i32
    return %c0_i32, %c0_i32_0 : i32, i32
  }
  func.func @transform_7(%arg0: i32) -> (i32, i32) {
    %c0_i32 = arith.constant 0 : i32
    %c0_i32_0 = arith.constant 0 : i32
    return %c0_i32, %arg0 : i32, i32
  }
}

</mosaic_0001>

<bundles_post_ra>
// kernel: tpu_custom_call.1
= control target key start
LH: loop header
LB: loop body
LE: loop exit
PB: predicated region body
PF: predicated region fallthrough
CT: control target
= control target key end

     0   :  { %s849_s0 = inlined_call_operand.vmem [shape: f32[4,8], index: 0, kind: input, shape index: {}]   ;;  %s850_s1 = inlined_call_operand.vmem [shape: f32[64,4], index: 1, kind: input, shape index: {}]   ;;  %s851_s2 = inlined_call_operand.vmem [shape: f32[64,1], index: 2, kind: input, shape index: {}]   ;;  %s852_s3 = inlined_call_operand.vmem [shape: f32[64,64], index: 3, kind: input, shape index: {}]   ;;  %s853_s4 = inlined_call_operand.vmem [shape: f32[64,1], index: 4, kind: input, shape index: {}]   ;;  %s854_s5 = inlined_call_operand.vmem [shape: f32[1,64], index: 5, kind: input, shape index: {}]   ;;  %s855_s6 = inlined_call_operand.<no memory space> [shape: f32[1,1], index: 6, kind: input, shape index: {}]   ;;  %s856_s7 = inlined_call_operand.hbm [shape: f32[2,8], index: 7, kind: output, shape index: {}]  }
   0x1   :  { %v12_v0 = vstv %s855_s6 }
   0x2   :  { %13 = vst [vmem:[#allocation2] sm:$0x1] %v12_v0 }
   0x3   :  { %v29_v1 = vld [vmem:[%s849_s0] sm:$0xf]  ;;  %vm111_vm0 = vcmask 1043456   ;;  %vm86_vm1 = vcmask 31744   ;;  %v31_v3 = vld [vmem:[%s850_s1 + $0x8] sm:$0xff]  ;;  %v32_v4 = vld [vmem:[%s850_s1 + $0x10] sm:$0xff] }
   0x4   :  { %v30_v2 = vld [vmem:[%s850_s1] sm:$0xff]  ;;  %587 = vmatprep.subr.msk.mxu0 %vm111_vm0, %v29_v1  ;;  %v680_v5 = vmov 0   ;;  %v45_v6 = vld [vmem:[%s851_s2 + $0x38] sm:$0xff]  ;;  %v43_v7 = vld [vmem:[%s851_s2 + $0x28] sm:$0xff] }
   0x5   :  { %589 = vmatprep.mubr.msk.f32.mxu0 %vm86_vm1, %v30_v2  ;;  %588 = vmatpush3.msk.msra.mxu0 %vm111_vm0, %v29_v1  ;;  %v33_v8 = vld [vmem:[%s850_s1 + $0x18] sm:$0xff]  ;;  %v34_v9 = vld [vmem:[%s850_s1 + $0x20] sm:$0xff]  ;;  %v44_v10 = vld [vmem:[%s851_s2 + $0x30] sm:$0xff] }
   0x6   :  { %652 = vset.pattern.permute.xlu0 %v680_v5  ;;  %590 = vmatmul.mubr.msk.f32.vlgmr.msra.gmra.mxu0 %vm86_vm1, %v31_v3  ;;  %v42_v11 = vld [vmem:[%s851_s2 + $0x20] sm:$0xff]  ;;  %v35_v12 = vld [vmem:[%s850_s1 + $0x28] sm:$0xff] }
   0x7   :  { %653 = vset.pattern.permute.xlu1 %v680_v5  ;;  %592 = vmatprep.mubr.msk.f32.mxu0 %vm86_vm1, %v32_v4 }
   0x8   :  { %83 = vperm.xlu0 %652, %v45_v6   ;;  %73 = vperm.xlu1 %653, %v43_v7  }
   0xa   :  { %593 = vmatmul.mubr.msk.f32.gmra.mxu0 %vm86_vm1, %v33_v8 }
   0xb   :  { %595 = vmatprep.mubr.msk.f32.mxu0 %vm86_vm1, %v34_v9 }
   0xc   :  { %78 = vperm.xlu0 %652, %v44_v10  }
   0xd   :  { %14 = vsyncpa [#allocation4], 0  ;;  %v36_v13 = vld [vmem:[%s850_s1 + $0x30] sm:$0xff]  ;;  %v41_v14 = vld [vmem:[%s851_s2 + $0x18] sm:$0xff]  ;;  %68 = vperm.xlu1 %653, %v42_v11   ;;  %vm284_vm2 = vcmask 523264   ;;  %v681_v4 = vmov 0.0  }
   0xe   :  { %v40_v15 = vld [vmem:[%s851_s2 + $0x10] sm:$0xff]  ;;  %596 = vmatmul.mubr.msk.f32.gmra.mxu0 %vm86_vm1, %v35_v12  ;;  %v37_v16 = vld [vmem:[%s850_s1 + $0x38] sm:$0xff]  ;;  %v39_v17 = vld [vmem:[%s851_s2 + $0x8] sm:$0xff]  ;;  %629 = vmatprep.subr.mxu0 %v681_v4  ;;  %vm682_vm3 = vmmov 0   ;;  %vm517_vm4 = vcmask 1040384   ;;  %vm519_vm5 = vcmask 58368  }
   0xf   :  { %598 = vmatprep.mubr.msk.f32.mxu0 %vm86_vm1, %v36_v13  ;;  %v38_v18 = vld [vmem:[%s851_s2] sm:$0xff]  ;;  %v243_v19 = vld [vmem:[%s853_s4 + $0x38] sm:$0xff]  ;;  %v242_v20 = vld [vmem:[%s853_s4 + $0x30] sm:$0xff] }
  0x10   :  { %63 = vperm.xlu0 %652, %v41_v14   ;;  %v241_v21 = vld [vmem:[%s853_s4 + $0x28] sm:$0xff]  ;;  %v240_v22 = vld [vmem:[%s853_s4 + $0x20] sm:$0xff]  ;;  %v239_v23 = vld [vmem:[%s853_s4 + $0x18] sm:$0xff] }
  0x11   :  { %58 = vperm.xlu1 %653, %v40_v15   ;;  %v238_v24 = vld [vmem:[%s853_s4 + $0x10] sm:$0xff]  ;;  %v237_v25 = vld [vmem:[%s853_s4 + $0x8] sm:$0xff]  ;;  %v236_v26 = vld [vmem:[%s853_s4] sm:$0xff] }
  0x12   :  { %599 = vmatmul.mubr.msk.f32.gmra.mxu0 %vm86_vm1, %v37_v16  ;;  %v423_v27 = vld [vmem:[#allocation2] sm:$0x1]  ;;  %v229_v61 = vld [vmem:[%s852_s3 + $0x8] sm:$0xff]  ;;  %v230_v62 = vld [vmem:[%s852_s3 + $0x10] sm:$0xff] }
  0x13   :  { %v228_v28 = vld [vmem:[%s852_s3] sm:$0xff]  ;;  %v231_v63 = vld [vmem:[%s852_s3 + $0x18] sm:$0xff]  ;;  %v233_v1 = vld [vmem:[%s852_s3 + $0x28] sm:$0xff]  ;;  %645 = vmatprep.mubr.msk.f32.mxu0 %vm682_vm3, %v681_v4 }
  0x14   :  { %53 = vperm.xlu0 %652, %v39_v17   ;;  %617 = vmatprep.mubr.msk.f32.mxu1 %vm284_vm2, %v228_v28  ;;  %v232_v0 = vld [vmem:[%s852_s3 + $0x20] sm:$0xff]  ;;  %v234_v2 = vld [vmem:[%s852_s3 + $0x30] sm:$0xff]  ;;  %v235_v3 = vld [vmem:[%s852_s3 + $0x38] sm:$0xff] }
  0x15   :  { %48 = vperm.xlu1 %653, %v38_v18  }
  0x18   :  { %281 = vperm.xlu0 %652, %v243_v19  }
  0x19   :  { %276 = vperm.xlu1 %653, %v242_v20  }
  0x1c   :  { %271 = vperm.xlu0 %652, %v241_v21  }
  0x1d   :  { %266 = vperm.xlu1 %653, %v240_v22  }
  0x20   :  { %261 = vperm.xlu0 %652, %v239_v23  }
  0x21   :  { %256 = vperm.xlu1 %653, %v238_v24  }
  0x24   :  { %251 = vperm.xlu0 %652, %v237_v25  }
  0x25   :  { %246 = vperm.xlu1 %653, %v236_v26  }
  0x28   :  { %426 = vperm.xlu0 %652, %v423_v27  }
  0x83   :  { %v84_v31 = vpop.permute.xlu0 %83  ;;  %v74_v33 = vpop.permute.xlu1 %73 }
  0x87   :  { %v79_v36 = vpop.permute.xlu0 %78 }
  0x88   :  { %v69_v38 = vpop.permute.xlu1 %68 }
  0x8b   :  { %v64_v45 = vpop.permute.xlu0 %63 }
  0x8c   :  { %v59_v48 = vpop.permute.xlu1 %58 }
  0x8f   :  { %v54_v53 = vpop.permute.xlu0 %53 }
  0x90   :  { %v49_v56 = vpop.permute.xlu1 %48 }
  0x93   :  { %v282_v7 = vpop.permute.xlu0 %281 }
  0x94   :  { %v277_v9 = vpop.permute.xlu1 %276 }
  0x97   :  { %v272_v12 = vpop.permute.xlu0 %271 }
  0x98   :  { %v267_v14 = vpop.permute.xlu1 %266 }
  0x9b   :  { %v262_v21 = vpop.permute.xlu0 %261 }
  0x9c   :  { %v257_v24 = vpop.permute.xlu1 %256 }
  0xc6   :  { %v591_v29 = vpop.f32.mrf.mxu0 }
  0xc7   :  { %v187_v54 = vadd.f32 %v591_v29, %v54_v53  ;;  %v252_v29 = vpop.permute.xlu0 %251 }
  0xc8   :  { %v181_v30 = vpop.f32.mrf.mxu0 }
  0xc9   :  { %v182_v57 = vadd.f32 %v181_v30, %v49_v56  ;;  %v221_v59 = vmax.f32 %v187_v54, 0.0 }
  0xca   :  { %v594_v32 = vpop.f32.mrf.mxu0 }
  0xcb   :  { %v197_v49 = vadd.f32 %v594_v32, %v64_v45  ;;  %v220_v60 = vmax.f32 %v182_v57, 0.0  ;;  %v247_v32 = vpop.permute.xlu1 %246 }
  0xcc   :  { %v191_v34 = vpop.f32.mrf.mxu0 }
  0xcd   :  { %v192_v51 = vadd.f32 %v191_v34, %v59_v48  ;;  %v223_v55 = vmax.f32 %v197_v49, 0.0 }
  0xce   :  { %v597_v35 = vpop.f32.mrf.mxu0 }
  0xcf   :  { %v207_v42 = vadd.f32 %v597_v35, %v74_v33  ;;  %v222_v58 = vmax.f32 %v192_v51, 0.0 }
  0xd0   :  { %v201_v37 = vpop.f32.mrf.mxu0 }
  0xd1   :  { %v202_v46 = vadd.f32 %v201_v37, %v69_v38  ;;  %v225_v50 = vmax.f32 %v207_v42, 0.0  ;;  %v422_v37 = vld [vmem:[%s854_s5] sm:$0x1]  ;;  %v429_v38 = vlaneseq  ;;  %s683_s5 = smov [#allocation3]  }
  0xd2   :  { %v600_v39 = vpop.f32.mrf.mxu0  ;;  %s527_s14 = sshll.u32 %s683_s5, 4  ;;  %s528_s14 = int_to_ptr.vmem [resolvable:$true] %s527_s14 }
  0xd3   :  { %v217_v40 = vadd.f32 %v600_v39, %v84_v31  ;;  %v224_v52 = vmax.f32 %v202_v46, 0.0  ;;  %v430_v39 = vshrl.u32 %v429_v38, 7  ;;  %s658_s15 = scalar_lea.vmem %s528_s14, 32  ;;  %p663_p1 = scmp.lt.s32.totalorder %s528_s14, %s528_s14 }
  0xd4   :  { %v211_v41 = vpop.f32.mrf.mxu0  ;;  %p659_p0 = scmp.ne.s32.totalorder %s528_s14, %s658_s15  ;;  %p664_p2 = scmp.lt.s32.totalorder %s658_s15, %s658_s15 }
  0xd5   :  { %v227_v43 = vmax.f32 %v217_v40, 0.0  ;;  %v212_v44 = vadd.f32 %v211_v41, %v79_v36  ;;  %v431_v40 = vsub.s32 0, %v430_v39  ;;  %v427_v41 = vpop.permute.xlu0 %426 }
  0xd6   :  { %p665_p3 = por %p664_p2, %p663_p1 }
  0xd7   :  { %v226_v47 = vmax.f32 %v212_v44, 0.0  ;;  %601 = vmatprep.subr.mxu1 %v227_v43  ;;  %v432_v42 = vrot.slane %v427_v41, %v431_v40 }
  0xd8   :  { %602 = vmatpush3.msra.mxu1 %v227_v43  ;;  %p666_p4 = pnand %p665_p3, %p659_p0 }
  0xd9   :  { %603 = vmatprep.subr.mxu1 %v226_v47 }
  0xda   :  { %604 = vmatpush3.msra.mxu1 %v226_v47 }
  0xdb   :  { %605 = vmatprep.subr.mxu1 %v225_v50 }
  0xdc   :  { %606 = vmatpush3.msra.mxu1 %v225_v50 }
  0xdd   :  { %607 = vmatprep.subr.mxu1 %v224_v52 }
  0xde   :  { %608 = vmatpush3.msra.mxu1 %v224_v52 }
  0xdf   :  { %609 = vmatprep.subr.mxu1 %v223_v55 }
  0xe0   :  { %610 = vmatpush3.msra.mxu1 %v223_v55 }
  0xe1   :  { %611 = vmatprep.subr.mxu1 %v222_v58 }
  0xe2   :  { %612 = vmatpush3.msra.mxu1 %v222_v58 }
  0xe3   :  { %613 = vmatprep.subr.mxu1 %v221_v59 }
  0xe4   :  { %614 = vmatpush3.msra.mxu1 %v221_v59 }
  0xe5   :  { %615 = vmatprep.subr.mxu1 %v220_v60 }
  0xe6   :  { %616 = vmatpush3.msra.mxu1 %v220_v60 }
  0xe7   :  { %618 = vmatmul.mubr.msk.f32.vlgmr.msra.gmra.mxu1 %vm284_vm2, %v229_v61 }
  0xe8   :  { %620 = vmatprep.mubr.msk.f32.mxu1 %vm284_vm2, %v230_v62 }
  0xeb   :  { %621 = vmatmul.mubr.msk.f32.gmra.mxu1 %vm284_vm2, %v231_v63 }
  0xec   :  { %623 = vmatprep.mubr.msk.f32.mxu1 %vm284_vm2, %v232_v0 }
  0xef   :  { %624 = vmatmul.mubr.msk.f32.gmra.mxu1 %vm284_vm2, %v233_v1 }
  0xf0   :  { %626 = vmatprep.mubr.msk.f32.mxu1 %vm284_vm2, %v234_v2 }
  0xf3   :  { %627 = vmatmul.mubr.msk.f32.gmra.mxu1 %vm284_vm2, %v235_v3 }
 0x1a7   :  { %v619_v5 = vpop.f32.mrf.mxu1 }
 0x1a8   :  { %v381_v30 = vadd.f32 %v619_v5, %v252_v29 }
 0x1a9   :  { %v375_v6 = vpop.f32.mrf.mxu1 }
 0x1aa   :  { %v376_v33 = vadd.f32 %v375_v6, %v247_v32  ;;  %v415_v35 = vmax.f32 %v381_v30, 0.0 }
 0x1ab   :  { %v622_v8 = vpop.f32.mrf.mxu1 }
 0x1ac   :  { %v391_v25 = vadd.f32 %v622_v8, %v262_v21  ;;  %v414_v36 = vmax.f32 %v376_v33, 0.0 }
 0x1ad   :  { %v385_v10 = vpop.f32.mrf.mxu1 }
 0x1ae   :  { %v386_v27 = vadd.f32 %v385_v10, %v257_v24  ;;  %v417_v31 = vmax.f32 %v391_v25, 0.0 }
 0x1af   :  { %v625_v11 = vpop.f32.mrf.mxu1 }
 0x1b0   :  { %v401_v18 = vadd.f32 %v625_v11, %v272_v12  ;;  %v416_v34 = vmax.f32 %v386_v27, 0.0 }
 0x1b1   :  { %v395_v13 = vpop.f32.mrf.mxu1 }
 0x1b2   :  { %v396_v22 = vadd.f32 %v395_v13, %v267_v14  ;;  %v419_v26 = vmax.f32 %v401_v18, 0.0 }
 0x1b3   :  { %v628_v15 = vpop.f32.mrf.mxu1 }
 0x1b4   :  { %v411_v16 = vadd.f32 %v628_v15, %v282_v7  ;;  %v418_v28 = vmax.f32 %v396_v22, 0.0 }
 0x1b5   :  { %v405_v17 = vpop.f32.mrf.mxu1 }
 0x1b6   :  { %v421_v19 = vmax.f32 %v411_v16, 0.0  ;;  %v406_v20 = vadd.f32 %v405_v17, %v277_v9 }
 0x1b8   :  { %v420_v23 = vmax.f32 %v406_v20, 0.0  ;;  %630 = vmatpush3.msra.mxu0 %v421_v19 }
 0x1b9   :  { %631 = vmatprep.subr.mxu0 %v681_v4 }
 0x1ba   :  { %632 = vmatpush3.msra.mxu0 %v420_v23 }
 0x1bb   :  { %633 = vmatprep.subr.mxu0 %v681_v4 }
 0x1bc   :  { %634 = vmatpush3.msra.mxu0 %v419_v26 }
 0x1bd   :  { %635 = vmatprep.subr.mxu0 %v681_v4 }
 0x1be   :  { %636 = vmatpush3.msra.mxu0 %v418_v28 }
 0x1bf   :  { %637 = vmatprep.subr.mxu0 %v681_v4 }
 0x1c0   :  { %638 = vmatpush3.msra.mxu0 %v417_v31 }
 0x1c1   :  { %639 = vmatprep.subr.mxu0 %v681_v4 }
 0x1c2   :  { %640 = vmatpush3.msra.mxu0 %v416_v34 }
 0x1c3   :  { %641 = vmatprep.subr.mxu0 %v681_v4 }
 0x1c4   :  { %642 = vmatpush3.msra.mxu0 %v415_v35 }
 0x1c5   :  { %643 = vmatprep.subr.mxu0 %v681_v4 }
 0x1c6   :  { %644 = vmatpush3.msra.mxu0 %v414_v36 }
 0x1c7   :  { %646 = vmatmul.mubr.msk.f32.vlgmr.msra.gmra.mxu0 %vm284_vm2, %v422_v37 }
 0x287   :  { %v502_v43 = vpop.f32.mrf.mxu0 }
 0x288   :  { %v503_v44 = vadd.f32 %v502_v43, %v432_v42 }
 0x289   :  { %v647_v45 = vpop.f32.mrf.mxu0 }
 0x28a   :  { %v506_v46 = vmul.f32 1.442695, %v503_v44 }
 0x28c   :  { %654 = vpow2.f32 %v506_v46 }
 0x299   :  { %v655_v47 = vpop.eup %654 }
 0x29a   :  { %v508_v48 = vadd.f32 1.0, %v655_v47 }
 0x29c   :  { %656 = vrcp.f32 %v508_v48 }
 0x2a9   :  { %v657_v49 = vpop.eup %656 }
 0x2aa   :  { %v510_v50 = vmul.f32 %v657_v49, %v508_v48 }
 0x2ac   :  { %v511_v51 = vsub.f32 2.0, %v510_v50 }
 0x2ae   :  { %v512_v52 = vmul.f32 %v657_v49, %v511_v51 }
 0x2b0   :  { %v513_v53 = vmul.f32 %v655_v47, %v512_v52 }
 0x2b2   :  { %v515_v54 = vrot.slane %v513_v53, 7 }
 0x2b4   :  { %v518_v55 = vsel %vm517_vm4, %v512_v52, %v515_v54 }
 0x2b5   :  { %520 = vst.msk [vmem:[#allocation3] sm:$0x3] %vm519_vm5, %v518_v55 }
 0x2b6   :  { %669 = shalt.err (!%p666_p4)
}
 0x2b7   :  { %530 = dma.vmem_to_hbm [thread:$0]  %s528_s14, 32, %s856_s7, [#allocation4]  }
 0x2b8   :  { %678 = dma.done.wait [#allocation4], 32  }
 0x2b9   :  { %679 = vsyncadd [#allocation4], 4294967264 }
 0x2ba   :  { %534 = vsyncpa [#allocation4], 1 }

</bundles_post_ra>
